<compile_context>
chip_gen: v7x
topology: tpu7x:2x2x1
jax: 0.10.0
libtpu: 0.0.40
codegen_flags: <defaults>
</compile_context>

<pallas_src>
import functools

import jax
import jax.numpy as jnp
from jax.experimental import pallas as pl
from jax.experimental.pallas import tpu as pltpu


def _round_up(a, m):
    return ((a + m - 1) // m) * m


def dnn_kernel(x_ref, w1_ref, b1_ref, w2_ref, b2_ref, o_ref):
    x = x_ref[...]                         # (TB, S)  f32
    w1 = w1_ref[...]                       # (S, H)   f32

    # ---- Layer 1 on the VPU: K=S is tiny, don't waste an MXU pass. ----
    # h = x @ W1 + b1 via S broadcast multiply-adds, all in f32.
    h = b1_ref[...] + x[:, 0:1] * w1[0:1, :]          # (TB, H)
    for k in range(1, x.shape[1]):                    # static unroll (S small)
        h = h + x[:, k:k + 1] * w1[k:k + 1, :]
    h = jnp.maximum(h, 0.0)                            # ReLU in f32

    # ---- Layer 2 on the MXU: bf16 inputs, f32 accumulation. ----
    out = jnp.dot(h.astype(jnp.bfloat16), w2_ref[...],
                  preferred_element_type=jnp.float32)  # (TB, O_pad)
    o_ref[...] = (out + b2_ref[...]).astype(o_ref.dtype)


def dnn_forward(x, w1, b1, w2_pad, b2_pad, action_dim, *, tb=256):
    """x: (B, S) f32; w1: (S, H) f32; b1: (1, H) f32;
    w2_pad: (H, O_pad) bf16 (zero-padded cols); b2_pad: (1, O_pad) f32.
    Returns (B, action_dim) f32."""
    B, S = x.shape
    H, O_pad = w2_pad.shape

    # Batch tile: multiple of 8 sublanes, capped at `tb`; pad B up to a tile.
    tb = min(tb, _round_up(max(B, 8), 8))
    B_pad = tb * pl.cdiv(B, tb)
    if B_pad != B:
        x = jnp.pad(x, ((0, B_pad - B), (0, 0)))

    out = pl.pallas_call(
        dnn_kernel,
        out_shape=jax.ShapeDtypeStruct((B_pad, O_pad), jnp.float32),
        grid=(B_pad // tb,),
        in_specs=[
            pl.BlockSpec((tb, S), lambda i: (i, 0)),      # streamed x tile
            pl.BlockSpec((S, H), lambda i: (0, 0)),       # resident W1
            pl.BlockSpec((1, H), lambda i: (0, 0)),       # resident b1
            pl.BlockSpec((H, O_pad), lambda i: (0, 0)),   # resident W2 (bf16)
            pl.BlockSpec((1, O_pad), lambda i: (0, 0)),   # resident b2
        ],
        out_specs=pl.BlockSpec((tb, O_pad), lambda i: (i, 0)),
        compiler_params=pltpu.CompilerParams(
            dimension_semantics=("parallel",)),
    )(x, w1, b1, w2_pad, b2_pad)

    # Slice away batch padding and the zero-padded output lanes.
    return out[:B, :action_dim]


def init_params(key, state_dim=5, hidden_dim=512, action_dim=3, out_pad=128):
    # PyTorch nn.Linear default init: U(-1/sqrt(fan_in), 1/sqrt(fan_in)).
    k1, k2, k3, k4 = jax.random.split(key, 4)
    bound1 = 1.0 / jnp.sqrt(state_dim)
    bound2 = 1.0 / jnp.sqrt(hidden_dim)
    w1 = jax.random.uniform(k1, (state_dim, hidden_dim), jnp.float32,
                            -bound1, bound1)
    b1 = jax.random.uniform(k2, (1, hidden_dim), jnp.float32, -bound1, bound1)
    w2 = jax.random.uniform(k3, (hidden_dim, action_dim), jnp.float32,
                            -bound2, bound2)
    b2 = jax.random.uniform(k4, (1, action_dim), jnp.float32, -bound2, bound2)
    # Lane-pad the output layer to 128 columns (extra columns exactly zero) so
    # the kernel's output store is an unmasked full-lane write.
    w2_pad = jnp.zeros((hidden_dim, out_pad), jnp.float32)
    w2_pad = w2_pad.at[:, :action_dim].set(w2).astype(jnp.bfloat16)
    b2_pad = jnp.zeros((1, out_pad), jnp.float32).at[:, :action_dim].set(b2)
    return w1, b1, w2_pad, b2_pad


if __name__ == "__main__":
    key = jax.random.PRNGKey(0)
    kx, kp = jax.random.split(key)

    B, state_dim, hidden_dim, action_dim = 8, 5, 512, 3
    x = jax.random.normal(kx, (B, state_dim), jnp.float32)
    w1, b1, w2_pad, b2_pad = init_params(kp, state_dim, hidden_dim, action_dim)

    fwd = jax.jit(functools.partial(dnn_forward, action_dim=action_dim))
    out = jax.block_until_ready(fwd(x, w1, b1, w2_pad, b2_pad))

    # Pure-JAX f32 reference (weights dequantized from the stored bf16 copy).
    w2_f32 = w2_pad.astype(jnp.float32)[:, :action_dim]
    b2_f32 = b2_pad[:, :action_dim]
    ref = jnp.maximum(x @ w1 + b1, 0.0) @ w2_f32 + b2_f32

    assert out.shape == (B, action_dim)
    # bf16 MXU path -> looser tolerance than pure f32.
    assert jnp.allclose(out, ref, atol=2e-2, rtol=2e-2)

    print("KERNEL_OK")
</pallas_src>

<mosaic_0001>
module attributes {stable_mosaic.version = 11 : i64} {
  func.func @dnn_kernel(%arg0: i32, %arg1: memref<8x5xf32, #tpu.memory_space<vmem>>, %arg2: memref<5x512xf32, #tpu.memory_space<vmem>>, %arg3: memref<1x512xf32, #tpu.memory_space<vmem>>, %arg4: memref<512x128xbf16, #tpu.memory_space<vmem>>, %arg5: memref<1x128xf32, #tpu.memory_space<vmem>>, %arg6: memref<8x128xf32, #tpu.memory_space<vmem>>) attributes {dimension_semantics = [#tpu.dimension_semantics<parallel>], iteration_bounds = array<i64: 1>, scalar_prefetch = 0 : i64, scratch_operands = 0 : i64, tpu.core_type = #tpu.core_type<tc>, window_params = [{transform_indices = @transform_0, window_bounds = array<i64: 8, 5>}, {pipeline_mode = #tpu.pipeline_mode<synchronous>, transform_indices = @transform_1, window_bounds = array<i64: 5, 512>}, {pipeline_mode = #tpu.pipeline_mode<synchronous>, transform_indices = @transform_2, window_bounds = array<i64: 1, 512>}, {pipeline_mode = #tpu.pipeline_mode<synchronous>, transform_indices = @transform_3, window_bounds = array<i64: 512, 128>}, {pipeline_mode = #tpu.pipeline_mode<synchronous>, transform_indices = @transform_4, window_bounds = array<i64: 1, 128>}, {transform_indices = @transform_5, window_bounds = array<i64: 8, 128>}]} {
    %c0 = arith.constant 0 : index
    %c0_0 = arith.constant 0 : index
    %0 = vector.load %arg1[%c0, %c0_0] : memref<8x5xf32, #tpu.memory_space<vmem>>, vector<8x5xf32>
    %c0_1 = arith.constant 0 : index
    %c0_2 = arith.constant 0 : index
    %1 = vector.load %arg2[%c0_1, %c0_2] : memref<5x512xf32, #tpu.memory_space<vmem>>, vector<5x512xf32>
    %c0_3 = arith.constant 0 : index
    %c0_4 = arith.constant 0 : index
    %2 = vector.load %arg3[%c0_3, %c0_4] : memref<1x512xf32, #tpu.memory_space<vmem>>, vector<1x512xf32>
    %3 = vector.extract_strided_slice %0 {offsets = [0, 0], sizes = [8, 1], strides = [1, 1]} : vector<8x5xf32> to vector<8x1xf32>
    %4 = vector.extract_strided_slice %1 {offsets = [0, 0], sizes = [1, 512], strides = [1, 1]} : vector<5x512xf32> to vector<1x512xf32>
    %5 = vector.broadcast %3 : vector<8x1xf32> to vector<8x512xf32>
    %6 = vector.broadcast %4 : vector<1x512xf32> to vector<8x512xf32>
    %7 = arith.mulf %5, %6 : vector<8x512xf32>
    %8 = vector.broadcast %2 : vector<1x512xf32> to vector<8x512xf32>
    %9 = arith.addf %8, %7 : vector<8x512xf32>
    %10 = vector.extract_strided_slice %0 {offsets = [0, 1], sizes = [8, 1], strides = [1, 1]} : vector<8x5xf32> to vector<8x1xf32>
    %11 = vector.extract_strided_slice %1 {offsets = [1, 0], sizes = [1, 512], strides = [1, 1]} : vector<5x512xf32> to vector<1x512xf32>
    %12 = vector.broadcast %10 : vector<8x1xf32> to vector<8x512xf32>
    %13 = vector.broadcast %11 : vector<1x512xf32> to vector<8x512xf32>
    %14 = arith.mulf %12, %13 : vector<8x512xf32>
    %15 = arith.addf %9, %14 : vector<8x512xf32>
    %16 = vector.extract_strided_slice %0 {offsets = [0, 2], sizes = [8, 1], strides = [1, 1]} : vector<8x5xf32> to vector<8x1xf32>
    %17 = vector.extract_strided_slice %1 {offsets = [2, 0], sizes = [1, 512], strides = [1, 1]} : vector<5x512xf32> to vector<1x512xf32>
    %18 = vector.broadcast %16 : vector<8x1xf32> to vector<8x512xf32>
    %19 = vector.broadcast %17 : vector<1x512xf32> to vector<8x512xf32>
    %20 = arith.mulf %18, %19 : vector<8x512xf32>
    %21 = arith.addf %15, %20 : vector<8x512xf32>
    %22 = vector.extract_strided_slice %0 {offsets = [0, 3], sizes = [8, 1], strides = [1, 1]} : vector<8x5xf32> to vector<8x1xf32>
    %23 = vector.extract_strided_slice %1 {offsets = [3, 0], sizes = [1, 512], strides = [1, 1]} : vector<5x512xf32> to vector<1x512xf32>
    %24 = vector.broadcast %22 : vector<8x1xf32> to vector<8x512xf32>
    %25 = vector.broadcast %23 : vector<1x512xf32> to vector<8x512xf32>
    %26 = arith.mulf %24, %25 : vector<8x512xf32>
    %27 = arith.addf %21, %26 : vector<8x512xf32>
    %28 = vector.extract_strided_slice %0 {offsets = [0, 4], sizes = [8, 1], strides = [1, 1]} : vector<8x5xf32> to vector<8x1xf32>
    %29 = vector.extract_strided_slice %1 {offsets = [4, 0], sizes = [1, 512], strides = [1, 1]} : vector<5x512xf32> to vector<1x512xf32>
    %30 = vector.broadcast %28 : vector<8x1xf32> to vector<8x512xf32>
    %31 = vector.broadcast %29 : vector<1x512xf32> to vector<8x512xf32>
    %32 = arith.mulf %30, %31 : vector<8x512xf32>
    %33 = arith.addf %27, %32 : vector<8x512xf32>
    %cst = arith.constant 0.000000e+00 : f32
    %34 = vector.broadcast %cst : f32 to vector<8x512xf32>
    %35 = arith.maximumf %33, %34 : vector<8x512xf32>
    %36 = arith.truncf %35 : vector<8x512xf32> to vector<8x512xbf16>
    %c0_5 = arith.constant 0 : index
    %c0_6 = arith.constant 0 : index
    %37 = vector.load %arg4[%c0_5, %c0_6] : memref<512x128xbf16, #tpu.memory_space<vmem>>, vector<512x128xbf16>
    %cst_7 = arith.constant dense<0.000000e+00> : vector<8x128xf32>
    %38 = tpu.matmul %36, %37, %cst_7 {dimension_numbers = #tpu.dot_dimension_numbers<[1], [0], [0], [1], [0, 0, 1, 1], [], []>} : vector<8x512xbf16>, vector<512x128xbf16>, vector<8x128xf32> -> vector<8x128xf32>
    %c0_8 = arith.constant 0 : index
    %c0_9 = arith.constant 0 : index
    %39 = vector.load %arg5[%c0_8, %c0_9] : memref<1x128xf32, #tpu.memory_space<vmem>>, vector<1x128xf32>
    %40 = vector.broadcast %39 : vector<1x128xf32> to vector<8x128xf32>
    %41 = arith.addf %38, %40 : vector<8x128xf32>
    %c0_10 = arith.constant 0 : index
    %c0_11 = arith.constant 0 : index
    %42 = vector.load %arg6[%c0_10, %c0_11] : memref<8x128xf32, #tpu.memory_space<vmem>>, vector<8x128xf32>
    tpu.vector_store %arg6[%c0_10, %c0_11], %41 {strides = array<i32>} : memref<8x128xf32, #tpu.memory_space<vmem>>, vector<8x128xf32>,
    return
  }
  func.func @transform_0(%arg0: i32) -> (i32, i32) {
    %c0_i32 = arith.constant 0 : i32
    %c0_i32_0 = arith.constant 0 : i32
    return %arg0, %c0_i32 : i32, i32
  }
  func.func @transform_1(%arg0: i32) -> (i32, i32) {
    %c0_i32 = arith.constant 0 : i32
    %c0_i32_0 = arith.constant 0 : i32
    %c0_i32_1 = arith.constant 0 : i32
    return %c0_i32, %c0_i32_0 : i32, i32
  }
  func.func @transform_2(%arg0: i32) -> (i32, i32) {
    %c0_i32 = arith.constant 0 : i32
    %c0_i32_0 = arith.constant 0 : i32
    %c0_i32_1 = arith.constant 0 : i32
    return %c0_i32, %c0_i32_0 : i32, i32
  }
  func.func @transform_3(%arg0: i32) -> (i32, i32) {
    %c0_i32 = arith.constant 0 : i32
    %c0_i32_0 = arith.constant 0 : i32
    %c0_i32_1 = arith.constant 0 : i32
    return %c0_i32, %c0_i32_0 : i32, i32
  }
  func.func @transform_4(%arg0: i32) -> (i32, i32) {
    %c0_i32 = arith.constant 0 : i32
    %c0_i32_0 = arith.constant 0 : i32
    %c0_i32_1 = arith.constant 0 : i32
    return %c0_i32, %c0_i32_0 : i32, i32
  }
  func.func @transform_5(%arg0: i32) -> (i32, i32) {
    %c0_i32 = arith.constant 0 : i32
    %c0_i32_0 = arith.constant 0 : i32
    return %arg0, %c0_i32 : i32, i32
  }
}

</mosaic_0001>

<bundles_post_ra>
// kernel: dnn_forward.1
= control target key start
LH: loop header
LB: loop body
LE: loop exit
PB: predicated region body
PF: predicated region fallthrough
CT: control target
= control target key end

     0   :  { %10 = vsyncpa [#allocation3], 0  ;;  %s892_s0 = inlined_call_operand.hbm [shape: f32[8,5], index: 0, kind: input, shape index: {}]   ;;  %s893_s1 = inlined_call_operand.hbm [shape: f32[5,512], index: 1, kind: input, shape index: {}]   ;;  %s894_s2 = inlined_call_operand.vmem [shape: f32[1,512], index: 2, kind: input, shape index: {}]   ;;  %s895_s3 = inlined_call_operand.hbm [shape: bf16[512,128], index: 3, kind: input, shape index: {}]   ;;  %s896_s4 = inlined_call_operand.vmem [shape: f32[1,128], index: 4, kind: input, shape index: {}]   ;;  %s897_s5 = inlined_call_operand.vmem [shape: f32[8,128], index: 5, kind: output, shape index: {}]  }
   0x1   :  { %11 = vsyncpa [#allocation5], 0  ;;  %s779_s18 = smov [#allocation4]   ;;  %s780_s20 = smov [#allocation2]  }
   0x2   :  { %s28_s19 = sshll.u32 %s779_s18, 4  ;;  %s18_s21 = sshll.u32 %s780_s20, 4  ;;  %s29_s19 = int_to_ptr.vmem [resolvable:$true] %s28_s19  ;;  %s19_s21 = int_to_ptr.vmem [resolvable:$true] %s18_s21 }
   0x3   :  { %s709_s24 = scalar_lea.hbm %s893_s1, 512 }
   0x4   :  { %p710_p0 = scmp.ne.s32.totalorder %s893_s1, %s709_s24  ;;  %p713_p1 = scmp.lt.u32.totalorder %s709_s24, %s893_s1 }
   0x6   :  { %p715_p2 = pnand %p713_p1, %p710_p0 }
   0x8   :  { %718 = shalt.err (!%p715_p2)
}
   0x9   :  { %s719_s29 = scalar_lea.vmem %s29_s19, 512  ;;  %p724_p4 = scmp.lt.s32.totalorder %s29_s19, %s29_s19 }
   0xa   :  { %p720_p3 = scmp.ne.s32.totalorder %s29_s19, %s719_s29  ;;  %p725_p5 = scmp.lt.s32.totalorder %s719_s29, %s719_s29 }
   0xc   :  { %p726_p6 = por %p725_p5, %p724_p4 }
   0xe   :  { %p727_p7 = pnand %p726_p6, %p720_p3 }
  0x10   :  { %730 = shalt.err (!%p727_p7)
}
  0x11   :  { %31 = dma.hbm_to_vmem [thread:$0]  %s893_s1, 512, %s29_s19, [#allocation5]  }
  0x12   :  { %s731_s9 = scalar_lea.hbm %s892_s0, 128 }
  0x13   :  { %p732_p8 = scmp.ne.s32.totalorder %s892_s0, %s731_s9  ;;  %p735_p9 = scmp.lt.u32.totalorder %s731_s9, %s892_s0 }
  0x15   :  { %p737_p10 = pnand %p735_p9, %p732_p8 }
  0x17   :  { %740 = shalt.err (!%p737_p10)
}
  0x18   :  { %s741_s14 = scalar_lea.vmem %s19_s21, 128  ;;  %p746_p12 = scmp.lt.s32.totalorder %s19_s21, %s19_s21 }
  0x19   :  { %p742_p11 = scmp.ne.s32.totalorder %s19_s21, %s741_s14  ;;  %p747_p13 = scmp.lt.s32.totalorder %s741_s14, %s741_s14 }
  0x1b   :  { %p748_p0 = por %p747_p13, %p746_p12 }
  0x1d   :  { %p749_p1 = pnand %p748_p0, %p742_p11 }
  0x1f   :  { %752 = shalt.err (!%p749_p1)
}
  0x20   :  { %21 = dma.hbm_to_vmem [thread:$0]  %s892_s0, 128, %s19_s21, [#allocation3]  }
  0x21   :  { %s781_s16 = smov [#allocation6]   ;;  %s753_s20 = scalar_lea.hbm %s895_s3, 4096 }
  0x22   :  { %s39_s17 = sshll.u32 %s781_s16, 4  ;;  %p754_p2 = scmp.ne.s32.totalorder %s895_s3, %s753_s20  ;;  %s40_s17 = int_to_ptr.vmem [resolvable:$true] %s39_s17 }
  0x23   :  { %p757_p3 = scmp.lt.u32.totalorder %s753_s20, %s895_s3 }
  0x25   :  { %p759_p4 = pnand %p757_p3, %p754_p2 }
  0x27   :  { %762 = shalt.err (!%p759_p4)
}
  0x28   :  { %s763_s26 = scalar_lea.vmem %s40_s17, 4096  ;;  %p768_p6 = scmp.lt.s32.totalorder %s40_s17, %s40_s17 }
  0x29   :  { %p764_p5 = scmp.ne.s32.totalorder %s40_s17, %s763_s26  ;;  %p769_p7 = scmp.lt.s32.totalorder %s763_s26, %s763_s26 }
  0x2b   :  { %p770_p8 = por %p769_p7, %p768_p6 }
  0x2d   :  { %p771_p9 = pnand %p770_p8, %p764_p5 }
  0x2f   :  { %774 = shalt.err (!%p771_p9)
}
  0x30   :  { %s782_s0 = smov 64   ;;  %s783_s21 = smov 4  }
  0x31   :  { %45 = dma.hbm_to_vmem [thread:$0]  %s895_s3, 4096, %s40_s17, [#allocation5], %s782_s0, %s782_s0, %s783_s21  }
  0x32   :  { %775 = dma.done.wait [#allocation3], 128  }
  0x33   :  { %776 = vsyncadd [#allocation3], 4294967168 }
  0x34   :  { %777 = dma.done.wait [#allocation5], 4608  }
  0x35   :  { %778 = vsyncadd [#allocation5], 4294962688  ;;  %v784_v0 = vmov 0   ;;  %v785_v1 = vmov 2   ;;  %v58_v2 = vld [vmem:[#allocation2] sm:$0xff]  ;;  %v677_v3 = vld [vmem:[#allocation6 + $0x40] sm:$0xff]   ;;  %v69_v38 = vlaneseq }
  0x36   :  { %671 = vset.pattern.permute.xlu0 %v784_v0  ;;  %673 = vset.pattern.permute.xlu1 %v785_v1  ;;  %v678_v4 = vld [vmem:[#allocation6 + $0xc0] sm:$0xff]   ;;  %v786_v7 = vmov 1   ;;  %v787_v8 = vmov 3   ;;  %v681_v9 = vld [vmem:[#allocation6 + $0x48] sm:$0xff]   ;;  %v685_v13 = vld [vmem:[#allocation6 + $0x50] sm:$0xff]   ;;  %v788_v14 = vmov 4  }
  0x37   :  { %66 = vperm.xlu0 %671, %v58_v2   ;;  %143 = vperm.xlu1 %673, %v58_v2   ;;  %v679_v5 = vld [vmem:[#allocation6] sm:$0xff]   ;;  %v682_v10 = vld [vmem:[#allocation6 + $0xc8] sm:$0xff]   ;;  %v686_v15 = vld [vmem:[#allocation6 + $0xd0] sm:$0xff]   ;;  %v70_v39 = vshrl.u32 %v69_v38, 7 }
  0x38   :  { %617 = vmatprep.subr.bf16.mxu0 %v677_v3  ;;  %639 = vmatprep.subr.bf16.mxu1 %v678_v4  ;;  %v680_v6 = vld [vmem:[#allocation6 + $0x80] sm:$0xff]   ;;  %v683_v11 = vld [vmem:[#allocation6 + $0x8] sm:$0xff]   ;;  %v687_v16 = vld [vmem:[#allocation6 + $0x10] sm:$0xff]  }
  0x39   :  { %618 = vmatpush3.bf16.msra.mxu0 %v679_v5  ;;  %640 = vmatpush3.bf16.msra.mxu1 %v680_v6  ;;  %v684_v12 = vld [vmem:[#allocation6 + $0x88] sm:$0xff]   ;;  %v688_v17 = vld [vmem:[#allocation6 + $0x90] sm:$0xff]   ;;  %v689_v18 = vld [vmem:[#allocation6 + $0x58] sm:$0xff]   ;;  %v71_v41 = vsub.s32 0, %v70_v39  ;;  %v100_v45 = vsub.s32 2, %v70_v39  ;;  %v96_v46 = vsub.s32 1, %v70_v39 }
  0x3a   :  { %619 = vmatprep.subr.bf16.mxu0 %v681_v9  ;;  %641 = vmatprep.subr.bf16.mxu1 %v682_v10  ;;  %v690_v19 = vld [vmem:[#allocation6 + $0xd8] sm:$0xff]   ;;  %v693_v22 = vld [vmem:[#allocation6 + $0x60] sm:$0xff]   ;;  %v697_v26 = vld [vmem:[#allocation6 + $0x68] sm:$0xff]   ;;  %v104_v47 = vsub.s32 3, %v70_v39  ;;  %v204_v53 = vsub.s32 4, %v70_v39 }
  0x3b   :  { %672 = vset.pattern.permute.xlu0 %v786_v7  ;;  %674 = vset.pattern.permute.xlu1 %v787_v8  ;;  %v691_v20 = vld [vmem:[#allocation6 + $0x18] sm:$0xff]   ;;  %v694_v23 = vld [vmem:[#allocation6 + $0xe0] sm:$0xff]   ;;  %v698_v27 = vld [vmem:[#allocation6 + $0xe8] sm:$0xff]  }
  0x3c   :  { %115 = vperm.xlu0 %672, %v58_v2   ;;  %171 = vperm.xlu1 %674, %v58_v2   ;;  %v692_v21 = vld [vmem:[#allocation6 + $0x98] sm:$0xff]   ;;  %v695_v24 = vld [vmem:[#allocation6 + $0x20] sm:$0xff]   ;;  %v699_v28 = vld [vmem:[#allocation6 + $0x28] sm:$0xff]  }
  0x3d   :  { %620 = vmatpush3.bf16.msra.mxu0 %v683_v11  ;;  %642 = vmatpush3.bf16.msra.mxu1 %v684_v12  ;;  %v696_v25 = vld [vmem:[#allocation6 + $0xa0] sm:$0xff]   ;;  %v700_v29 = vld [vmem:[#allocation6 + $0xa8] sm:$0xff]   ;;  %v701_v30 = vld [vmem:[#allocation6 + $0x70] sm:$0xff]  }
  0x3e   :  { %621 = vmatprep.subr.bf16.mxu0 %v685_v13  ;;  %643 = vmatprep.subr.bf16.mxu1 %v686_v15  ;;  %v702_v31 = vld [vmem:[#allocation6 + $0xf0] sm:$0xff]   ;;  %v705_v34 = vld [vmem:[#allocation6 + $0x78] sm:$0xff]   ;;  %v855_v40 = vld [vmem:[#allocation4] sm:$0x1f] }
  0x3f   :  { %v703_v32 = vld [vmem:[#allocation6 + $0x30] sm:$0xff]   ;;  %v706_v35 = vld [vmem:[#allocation6 + $0xf8] sm:$0xff]   ;;  %v857_v42 = vld [vmem:[#allocation4 + $0x8] sm:$0x1f]  ;;  %v72_v48 = vrot.slane %v855_v40, %v71_v41  ;;  %v149_v54 = vrot.slane %v855_v40, %v100_v45  ;;  %v121_v4 = vrot.slane %v855_v40, %v96_v46  ;;  %v177_v8 = vrot.slane %v855_v40, %v104_v47 }
  0x40   :  { %675 = vset.pattern.permute.xlu1 %v788_v14  ;;  %676 = vset.pattern.permute.xlu0 %v788_v14  ;;  %v704_v33 = vld [vmem:[#allocation6 + $0xb0] sm:$0xff]   ;;  %v707_v36 = vld [vmem:[#allocation6 + $0x38] sm:$0xff]   ;;  %v76_v49 = vrot.slane %v857_v42, %v71_v41  ;;  %v153_v55 = vrot.slane %v857_v42, %v100_v45  ;;  %v125_v5 = vrot.slane %v857_v42, %v96_v46 }
  0x41   :  { %199 = vperm.xlu1 %675, %v58_v2   ;;  %622 = vmatpush3.bf16.msra.mxu0 %v687_v16  ;;  %v708_v37 = vld [vmem:[#allocation6 + $0xb8] sm:$0xff]   ;;  %v859_v43 = vld [vmem:[#allocation4 + $0x10] sm:$0x1f]  ;;  %v205_v10 = vrot.slane %v855_v40, %v204_v53  ;;  %v181_v12 = vrot.slane %v857_v42, %v104_v47  ;;  %v209_v13 = vrot.slane %v857_v42, %v204_v53 }
  0x42   :  { %644 = vmatpush3.bf16.msra.mxu1 %v688_v17  ;;  %623 = vmatprep.subr.bf16.mxu0 %v689_v18  ;;  %v861_v44 = vld [vmem:[#allocation4 + $0x18] sm:$0x1f]  ;;  %v80_v50 = vrot.slane %v859_v43, %v71_v41  ;;  %v157_v56 = vrot.slane %v859_v43, %v100_v45  ;;  %v129_v6 = vrot.slane %v859_v43, %v96_v46 }
  0x43   :  { %645 = vmatprep.subr.bf16.mxu1 %v690_v19  ;;  %v84_v51 = vrot.slane %v861_v44, %v71_v41  ;;  %v63_v52 = vld [vmem:[%s894_s2] sm:$0xf]  ;;  %v161_v57 = vrot.slane %v861_v44, %v100_v45  ;;  %v133_v7 = vrot.slane %v861_v44, %v96_v46  ;;  %v185_v9 = vrot.slane %v859_v43, %v104_v47 }
  0x44   :  { %v93_v60 = vrot.slane %v63_v52, %v71_v41  ;;  %v97_v61 = vrot.slane %v63_v52, %v96_v46  ;;  %v101_v62 = vrot.slane %v63_v52, %v100_v45  ;;  %v105_v63 = vrot.slane %v63_v52, %v104_v47 }
  0x45   :  { %624 = vmatpush3.bf16.msra.mxu0 %v691_v20  ;;  %v213_v11 = vrot.slane %v859_v43, %v204_v53  ;;  %v189_v14 = vrot.slane %v861_v44, %v104_v47  ;;  %v217_v15 = vrot.slane %v861_v44, %v204_v53 }
  0x46   :  { %646 = vmatpush3.bf16.msra.mxu1 %v692_v21  ;;  %625 = vmatprep.subr.bf16.mxu0 %v693_v22 }
  0x47   :  { %647 = vmatprep.subr.bf16.mxu1 %v694_v23 }
  0x49   :  { %626 = vmatpush3.bf16.msra.mxu0 %v695_v24 }
  0x4a   :  { %648 = vmatpush3.bf16.msra.mxu1 %v696_v25  ;;  %627 = vmatprep.subr.bf16.mxu0 %v697_v26 }
  0x4b   :  { %649 = vmatprep.subr.bf16.mxu1 %v698_v27 }
  0x4d   :  { %628 = vmatpush3.bf16.msra.mxu0 %v699_v28 }
  0x4e   :  { %650 = vmatpush3.bf16.msra.mxu1 %v700_v29  ;;  %629 = vmatprep.subr.bf16.mxu0 %v701_v30 }
  0x4f   :  { %651 = vmatprep.subr.bf16.mxu1 %v702_v31 }
  0x51   :  { %630 = vmatpush3.bf16.msra.mxu0 %v703_v32 }
  0x52   :  { %652 = vmatpush3.bf16.msra.mxu1 %v704_v33  ;;  %631 = vmatprep.subr.bf16.mxu0 %v705_v34 }
  0x53   :  { %653 = vmatprep.subr.bf16.mxu1 %v706_v35 }
  0x55   :  { %632 = vmatpush3.bf16.msra.mxu0 %v707_v36 }
  0x56   :  { %654 = vmatpush3.bf16.msra.mxu1 %v708_v37 }
  0xb6   :  { %v67_v58 = vpop.permute.xlu0 %66  ;;  %v144_v59 = vpop.permute.xlu1 %143 }
  0xb7   :  { %v85_v0 = vmul.f32 %v72_v48, %v67_v58  ;;  %v86_v1 = vmul.f32 %v76_v49, %v67_v58  ;;  %v87_v2 = vmul.f32 %v80_v50, %v67_v58  ;;  %v88_v3 = vmul.f32 %v84_v51, %v67_v58 }
  0xb8   :  { %v162_v26 = vmul.f32 %v149_v54, %v144_v59  ;;  %v163_v27 = vmul.f32 %v153_v55, %v144_v59  ;;  %v164_v28 = vmul.f32 %v157_v56, %v144_v59  ;;  %v165_v29 = vmul.f32 %v161_v57, %v144_v59 }
  0xb9   :  { %v110_v16 = vadd.f32 %v93_v60, %v85_v0  ;;  %v111_v17 = vadd.f32 %v97_v61, %v86_v1  ;;  %v112_v18 = vadd.f32 %v101_v62, %v87_v2  ;;  %v113_v19 = vadd.f32 %v105_v63, %v88_v3  ;;  %v584_v1 = vld [vmem:[%s896_s4] ss:$0 sm:$0xff] }
  0xbb   :  { %v116_v20 = vpop.permute.xlu0 %115  ;;  %v172_v21 = vpop.permute.xlu1 %171 }
  0xbc   :  { %v134_v22 = vmul.f32 %v121_v4, %v116_v20  ;;  %v135_v23 = vmul.f32 %v125_v5, %v116_v20  ;;  %v136_v24 = vmul.f32 %v129_v6, %v116_v20  ;;  %v137_v25 = vmul.f32 %v133_v7, %v116_v20 }
  0xbd   :  { %v190_v34 = vmul.f32 %v177_v8, %v172_v21  ;;  %v192_v35 = vmul.f32 %v185_v9, %v172_v21  ;;  %v191_v36 = vmul.f32 %v181_v12, %v172_v21  ;;  %v193_v37 = vmul.f32 %v189_v14, %v172_v21 }
  0xbe   :  { %v138_v30 = vadd.f32 %v134_v22, %v110_v16  ;;  %v139_v31 = vadd.f32 %v135_v23, %v111_v17  ;;  %v140_v32 = vadd.f32 %v136_v24, %v112_v18  ;;  %v141_v33 = vadd.f32 %v137_v25, %v113_v19 }
  0xc0   :  { %v166_v38 = vadd.f32 %v162_v26, %v138_v30  ;;  %v168_v39 = vadd.f32 %v164_v28, %v140_v32  ;;  %v200_v40 = vpop.permute.xlu1 %199  ;;  %v167_v41 = vadd.f32 %v163_v27, %v139_v31  ;;  %v169_v42 = vadd.f32 %v165_v29, %v141_v33 }
  0xc1   :  { %v218_v43 = vmul.f32 %v205_v10, %v200_v40  ;;  %v220_v44 = vmul.f32 %v213_v11, %v200_v40  ;;  %v219_v45 = vmul.f32 %v209_v13, %v200_v40  ;;  %v221_v46 = vmul.f32 %v217_v15, %v200_v40 }
  0xc2   :  { %v195_v47 = vadd.f32 %v191_v36, %v167_v41  ;;  %v197_v48 = vadd.f32 %v193_v37, %v169_v42  ;;  %v194_v49 = vadd.f32 %v190_v34, %v166_v38  ;;  %v196_v50 = vadd.f32 %v192_v35, %v168_v39 }
  0xc4   :  { %v223_v51 = vadd.f32 %v219_v45, %v195_v47  ;;  %v225_v52 = vadd.f32 %v221_v46, %v197_v48  ;;  %v222_v53 = vadd.f32 %v218_v43, %v194_v49  ;;  %v224_v54 = vadd.f32 %v220_v44, %v196_v50 }
  0xc6   :  { %v227_v55 = vmax.f32 %v223_v51, 0.0  ;;  %v229_v56 = vmax.f32 %v225_v52, 0.0  ;;  %v226_v57 = vmax.f32 %v222_v53, 0.0  ;;  %v228_v58 = vmax.f32 %v224_v54, 0.0 }
  0xc8   :  { %v231_v59 = vpack.c.bf16 %v227_v55, %v227_v55  ;;  %v233_v60 = vpack.c.bf16 %v229_v56, %v229_v56  ;;  %v230_v61 = vpack.c.bf16 %v226_v57, %v226_v57  ;;  %v232_v62 = vpack.c.bf16 %v228_v58, %v228_v58 }
  0xca   :  { %529 = vmatprep.mubr.bf16.mxu0 %v231_v59  ;;  %569 = vmatprep.mubr.bf16.mxu1 %v233_v60 }
  0xcb   :  { %530 = vmatmul.mubr.bf16.vlgmr.msra.gmra.mrb[0].mxu0 %v230_v61  ;;  %570 = vmatmul.mubr.bf16.vlgmr.msra.gmra.mrb[0].mxu1 %v232_v62 }
 0x19e   :  { %v633_v63 = vpop.f32.mrb[0].mxu0  ;;  %v655_v0 = vpop.f32.mrb[0].mxu1 }
 0x19f   :  { %v634_v2 = vpop.f32.mrb[1].mxu0  ;;  %v656_v3 = vpop.f32.mrb[1].mxu1 }
 0x1a0   :  { %v635_v4 = vadd.f32 %v634_v2, %v633_v63  ;;  %v657_v5 = vadd.f32 %v656_v3, %v655_v0  ;;  %v636_v6 = vpop.f32.mrb[2].mxu0  ;;  %v658_v7 = vpop.f32.mrb[2].mxu1 }
 0x1a1   :  { %v637_v8 = vpop.f32.mrb[3].mxu0  ;;  %v659_v9 = vpop.f32.mrb[3].mxu1 }
 0x1a2   :  { %v532_v10 = vadd.f32 %v635_v4, %v584_v1 }
 0x1a4   :  { %v572_v11 = vadd.f32 %v657_v5, %v532_v10 }
 0x1a6   :  { %577 = vst [vmem:[%s897_s5] sm:$0xff] %v572_v11 }
 0x1a7   :  { %582 = vsyncpa [#allocation3], 1 }
 0x1a8   :  { %583 = vsyncpa [#allocation5], 1 }

</bundles_post_ra>
